<compile_context>
chip_gen: v7x
topology: tpu7x:2x2x1
jax: 0.10.0
libtpu: 0.0.40
codegen_flags: <defaults>
</compile_context>

<pallas_src>
import functools

import jax
import jax.numpy as jnp
from jax import lax
from jax.experimental import pallas as pl
from jax.experimental.pallas import tpu as pltpu

HIDDEN = 64           # fc1 / fc2 width (matches the torch module)
TB_MAX = 1024         # max batch-tile rows (multiple of 8); ~0.5 MiB/tile double-
                      # buffered -> comfortably inside VMEM on v5e/v6e/v7x.
SINGLE_PASS_MAX = TB_MAX   # one-tile fused path threshold.  On v7x (2 TensorCores)
                           # this can be lowered (e.g. 256) so large batches take the
                           # two-kernel path with >= 2 "parallel" tiles and use both
                           # cores; v5e/v6e are single-TC so the fused path wins.


def _round_up(x, m):
    return ((x + m - 1) // m) * m


def _cdiv(a, b):
    return (a + b - 1) // b


# ---------------------------------------------------------------------------
# Shared trunk + fused heads (bf16 MXU operands, f32 accumulation / VPU).
# ---------------------------------------------------------------------------
def _trunk_heads(x, w1_ref, b1_ref, w2_ref, b2_ref, wh_ref, bh_ref):
    cdt = w1_ref.dtype                                # MXU operand dtype (bf16)
    h1 = jnp.dot(x, w1_ref[...], preferred_element_type=jnp.float32) + b1_ref[...]
    h1 = jnp.maximum(h1, 0.0)                         # relu(fc1), f32
    h2 = jnp.dot(h1.astype(cdt), w2_ref[...],
                 preferred_element_type=jnp.float32) + b2_ref[...]
    h2 = jnp.maximum(h2, 0.0)                         # relu(fc2), f32
    # Fused head matmul -> [TB, HEAD_W]: lanes 0..A-1 advantage, lane -1 value,
    # other lanes exactly zero (zero weights + zero bias).
    heads = jnp.dot(h2.astype(cdt), wh_ref[...],
                    preferred_element_type=jnp.float32) + bh_ref[...]
    return heads


def _masked_adv_rowsum(heads, value, row_offset, batch):
    # Padded head lanes are exact zeros, so row_sum(heads) - value is the sum over
    # the A advantage lanes.  Mask padded batch rows (biases make them nonzero).
    rowsum = jnp.sum(heads, axis=1, keepdims=True) - value          # [TB, 1]
    rows = lax.broadcasted_iota(jnp.int32, rowsum.shape, 0) + row_offset
    return jnp.where(rows < batch, rowsum, 0.0)                     # [TB, 1]


# ---------------------------------------------------------------------------
# Fast path: one tile -> trunk + heads + global mean + q in a single kernel.
# ---------------------------------------------------------------------------
def _fused_q_kernel(x_ref, w1_ref, b1_ref, w2_ref, b2_ref, wh_ref, bh_ref,
                    q_ref, *, batch, out_dim):
    heads = _trunk_heads(x_ref[...], w1_ref, b1_ref, w2_ref, b2_ref, wh_ref, bh_ref)
    value = heads[:, -1:]                                            # [TB, 1]
    rowsum = _masked_adv_rowsum(heads, value, 0, batch)
    mean = jnp.sum(rowsum) * (1.0 / (batch * out_dim))               # global adv mean
    q_ref[...] = heads[:, :out_dim] + value - mean                   # [TB, A] f32


# ---------------------------------------------------------------------------
# Multi-tile path, kernel 1: trunk + heads (bf16) + per-tile adv partial sum.
# ---------------------------------------------------------------------------
def _trunk_heads_kernel(x_ref, w1_ref, b1_ref, w2_ref, b2_ref, wh_ref, bh_ref,
                        heads_ref, psum_ref, *, batch, tile_b, out_dim):
    del out_dim
    i = pl.program_id(0)
    heads = _trunk_heads(x_ref[...], w1_ref, b1_ref, w2_ref, b2_ref, wh_ref, bh_ref)
    heads_ref[...] = heads.astype(heads_ref.dtype)                   # bf16 store
    value = heads[:, -1:]
    rowsum = _masked_adv_rowsum(heads, value, i * tile_b, batch)
    partial = jnp.sum(rowsum)                                        # scalar, f32
    psum_ref[...] = jnp.zeros(psum_ref.shape, jnp.float32) + partial


# ---------------------------------------------------------------------------
# Multi-tile path, kernel 2: q = adv + value - global_mean, narrow [TB, A] store.
# ---------------------------------------------------------------------------
def _combine_kernel(heads_ref, mean_ref, q_ref, *, out_dim):
    heads = heads_ref[...].astype(jnp.float32)                       # bf16 -> f32
    value = heads[:, -1:]
    mean = mean_ref[0, 0]                                            # SMEM scalar
    q_ref[...] = heads[:, :out_dim] + value - mean


def dueling_dqn_forward(x, params, compute_dtype=jnp.bfloat16):
    B, D_in = x.shape
    A = params["wa"].shape[1]
    HEAD_W = max(128, _round_up(A + 1, 128))          # lane-dense fused-head width

    # ---- parameter packing (in a training loop you would pre-pack this once).
    f32 = jnp.float32
    w1 = params["w1"].astype(compute_dtype)
    w2 = params["w2"].astype(compute_dtype)
    b1 = params["b1"].astype(f32)
    b2 = params["b2"].astype(f32)
    whead = jnp.zeros((HIDDEN, HEAD_W), f32)
    whead = whead.at[:, :A].set(params["wa"]).at[:, HEAD_W - 1].set(params["wv"][:, 0])
    whead = whead.astype(compute_dtype)
    bhead = jnp.zeros((1, HEAD_W), f32)
    bhead = bhead.at[:, :A].set(params["ba"]).at[:, HEAD_W - 1].set(params["bv"][:, 0])

    resident = lambda shape: pl.BlockSpec(shape, lambda i: (0, 0))   # VMEM resident
    weight_specs = [
        resident((D_in, HIDDEN)), resident((1, HIDDEN)),             # W1, b1
        resident((HIDDEN, HIDDEN)), resident((1, HIDDEN)),           # W2, b2
        resident((HIDDEN, HEAD_W)), resident((1, HEAD_W)),           # fused W, b
    ]

    # -----------------------------------------------------------------------
    # Fast path: single tile -> one launch, no heads slab, narrow q output.
    # -----------------------------------------------------------------------
    if B <= SINGLE_PASS_MAX:
        tb = _round_up(B, 8)
        B_pad = tb
        x_pad = jnp.zeros((B_pad, D_in), compute_dtype).at[:B].set(
            x.astype(compute_dtype))

        q_pad = pl.pallas_call(
            functools.partial(_fused_q_kernel, batch=B, out_dim=A),
            grid=(1,),
            in_specs=[pl.BlockSpec((tb, D_in), lambda i: (i, 0))] + weight_specs,
            out_specs=pl.BlockSpec((tb, A), lambda i: (i, 0)),
            out_shape=jax.ShapeDtypeStruct((B_pad, A), jnp.float32),
            compiler_params=pltpu.CompilerParams(
                dimension_semantics=("arbitrary",)),
        )(x_pad, w1, b1, w2, b2, whead, bhead)
        return q_pad[:B] if B_pad != B else q_pad

    # -----------------------------------------------------------------------
    # Multi-tile path: the global advantage mean couples all batch rows, so it
    # needs a second (cheap) pass; the batch axis stays "parallel".
    # -----------------------------------------------------------------------
    num_tiles = max(2, _cdiv(B, TB_MAX))              # >=2 keeps both v7x TCs busy
    tb = _round_up(_cdiv(B, num_tiles), 8)            # padding < 8 rows
    B_pad = num_tiles * tb
    x_pad = jnp.zeros((B_pad, D_in), compute_dtype).at[:B].set(x.astype(compute_dtype))

    heads, psum = pl.pallas_call(
        functools.partial(_trunk_heads_kernel, batch=B, tile_b=tb, out_dim=A),
        grid=(num_tiles,),
        in_specs=[pl.BlockSpec((tb, D_in), lambda i: (i, 0))] + weight_specs,
        out_specs=(
            pl.BlockSpec((tb, HEAD_W), lambda i: (i, 0)),            # heads (bf16)
            pl.BlockSpec((1, 8, 128), lambda i: (i, 0, 0)),          # per-tile sum
        ),
        out_shape=(
            jax.ShapeDtypeStruct((B_pad, HEAD_W), jnp.bfloat16),
            jax.ShapeDtypeStruct((num_tiles, 8, 128), jnp.float32),
        ),
        compiler_params=pltpu.CompilerParams(dimension_semantics=("parallel",)),
    )(x_pad, w1, b1, w2, b2, whead, bhead)

    # Tiny scalar reduce between the two passes: global advantage mean
    # (torch: advantage.mean() over ALL B*A elements; computed from f32 heads).
    mean = (jnp.sum(psum[:, 0, 0]) / (B * A)).reshape(1, 1).astype(jnp.float32)

    q_pad = pl.pallas_call(
        functools.partial(_combine_kernel, out_dim=A),
        grid=(num_tiles,),
        in_specs=[
            pl.BlockSpec((tb, HEAD_W), lambda i: (i, 0)),
            pl.BlockSpec(memory_space=pltpu.MemorySpace.SMEM),       # scalar mean
        ],
        out_specs=pl.BlockSpec((tb, A), lambda i: (i, 0)),           # narrow q
        out_shape=jax.ShapeDtypeStruct((B_pad, A), jnp.float32),
        compiler_params=pltpu.CompilerParams(dimension_semantics=("parallel",)),
    )(heads, mean)

    return q_pad[:B] if B_pad != B else q_pad


def init_params(key, input_dim, output_dim):
    """Deterministic synthetic init (Kaiming-uniform-ish, like torch.nn.Linear).
    Weights stored as [in, out] (transposed vs torch), biases as [1, out]."""
    def linear(key, fan_in, fan_out):
        kw, kb = jax.random.split(key)
        bound = 1.0 / jnp.sqrt(fan_in)
        w = jax.random.uniform(kw, (fan_in, fan_out), jnp.float32, -bound, bound)
        b = jax.random.uniform(kb, (1, fan_out), jnp.float32, -bound, bound)
        return w, b

    k1, k2, k3, k4 = jax.random.split(key, 4)
    w1, b1 = linear(k1, input_dim, HIDDEN)
    w2, b2 = linear(k2, HIDDEN, HIDDEN)
    wv, bv = linear(k3, HIDDEN, 1)
    wa, ba = linear(k4, HIDDEN, output_dim)
    return {"w1": w1, "b1": b1, "w2": w2, "b2": b2,
            "wv": wv, "bv": bv, "wa": wa, "ba": ba}


def reference_forward(x, p, compute_dtype=jnp.bfloat16, heads_storage_dtype=None):
    """Plain-JAX reference with the same precision recipe (bf16 MXU, f32 accum).
    heads_storage_dtype mimics the multi-tile kernel's bf16 heads round trip."""
    cdt = compute_dtype
    dot = lambda a, w: jnp.dot(a.astype(cdt), w.astype(cdt),
                               preferred_element_type=jnp.float32)
    h1 = jax.nn.relu(dot(x, p["w1"]) + p["b1"])
    h2 = jax.nn.relu(dot(h1, p["w2"]) + p["b2"])
    value = dot(h2, p["wv"]) + p["bv"]
    adv = dot(h2, p["wa"]) + p["ba"]
    mean = jnp.mean(adv)                       # mean is computed from f32 heads
    if heads_storage_dtype is not None:
        adv = adv.astype(heads_storage_dtype).astype(jnp.float32)
        value = value.astype(heads_storage_dtype).astype(jnp.float32)
    return value + (adv - mean)


if __name__ == "__main__":
    # NOTE: at this size the network is pure launch overhead; batch many env states
    # per call in real use to amortize it (both dispatch paths tile any batch size).
    input_dim = 16   # small state vector
    output_dim = 8   # number of discrete actions

    key = jax.random.PRNGKey(0)
    kx, kp, kx2 = jax.random.split(key, 3)
    params = init_params(kp, input_dim, output_dim)
    fwd = jax.jit(dueling_dqn_forward)

    # ---- small batch: single-pass fused path (trunk + heads + mean + q, 1 launch).
    batch = 2
    x = jax.random.normal(kx, (batch, input_dim), dtype=jnp.float32)
    q = jax.block_until_ready(fwd(x, params))
    q_ref = reference_forward(x, params)
    assert q.shape == (batch, output_dim)
    assert jnp.allclose(q, q_ref, atol=1e-4, rtol=1e-4), "single-pass mismatch"

    # ---- large batch: multi-tile path (bf16 heads slab + scalar reduce + combine).
    batch2 = 2500
    x2 = jax.random.normal(kx2, (batch2, input_dim), dtype=jnp.float32)
    q2 = jax.block_until_ready(fwd(x2, params))
    q2_ref = reference_forward(x2, params, heads_storage_dtype=jnp.bfloat16)
    assert q2.shape == (batch2, output_dim)
    assert jnp.allclose(q2, q2_ref, atol=2e-3, rtol=2e-3), "multi-tile mismatch"

    print("KERNEL_OK")
</pallas_src>

<mosaic_0001>
module attributes {stable_mosaic.version = 11 : i64} {
  func.func @_fused_q_kernel(%arg0: i32, %arg1: memref<8x16xbf16, #tpu.memory_space<vmem>>, %arg2: memref<16x64xbf16, #tpu.memory_space<vmem>>, %arg3: memref<1x64xf32, #tpu.memory_space<vmem>>, %arg4: memref<64x64xbf16, #tpu.memory_space<vmem>>, %arg5: memref<1x64xf32, #tpu.memory_space<vmem>>, %arg6: memref<64x128xbf16, #tpu.memory_space<vmem>>, %arg7: memref<1x128xf32, #tpu.memory_space<vmem>>, %arg8: memref<8x8xf32, #tpu.memory_space<vmem>>) attributes {dimension_semantics = [#tpu.dimension_semantics<arbitrary>], iteration_bounds = array<i64: 1>, scalar_prefetch = 0 : i64, scratch_operands = 0 : i64, tpu.core_type = #tpu.core_type<tc>, window_params = [{transform_indices = @transform_0, window_bounds = array<i64: 8, 16>}, {pipeline_mode = #tpu.pipeline_mode<synchronous>, transform_indices = @transform_1, window_bounds = array<i64: 16, 64>}, {pipeline_mode = #tpu.pipeline_mode<synchronous>, transform_indices = @transform_2, window_bounds = array<i64: 1, 64>}, {pipeline_mode = #tpu.pipeline_mode<synchronous>, transform_indices = @transform_3, window_bounds = array<i64: 64, 64>}, {pipeline_mode = #tpu.pipeline_mode<synchronous>, transform_indices = @transform_4, window_bounds = array<i64: 1, 64>}, {pipeline_mode = #tpu.pipeline_mode<synchronous>, transform_indices = @transform_5, window_bounds = array<i64: 64, 128>}, {pipeline_mode = #tpu.pipeline_mode<synchronous>, transform_indices = @transform_6, window_bounds = array<i64: 1, 128>}, {transform_indices = @transform_7, window_bounds = array<i64: 8, 8>}]} {
    %c0 = arith.constant 0 : index
    %c0_0 = arith.constant 0 : index
    %0 = vector.load %arg1[%c0, %c0_0] : memref<8x16xbf16, #tpu.memory_space<vmem>>, vector<8x16xbf16>
    %c0_1 = arith.constant 0 : index
    %c0_2 = arith.constant 0 : index
    %1 = vector.load %arg2[%c0_1, %c0_2] : memref<16x64xbf16, #tpu.memory_space<vmem>>, vector<16x64xbf16>
    %cst = arith.constant dense<0.000000e+00> : vector<8x64xf32>
    %2 = tpu.matmul %0, %1, %cst {dimension_numbers = #tpu.dot_dimension_numbers<[1], [0], [0], [1], [0, 0, 1, 1], [], []>} : vector<8x16xbf16>, vector<16x64xbf16>, vector<8x64xf32> -> vector<8x64xf32>
    %c0_3 = arith.constant 0 : index
    %c0_4 = arith.constant 0 : index
    %3 = vector.load %arg3[%c0_3, %c0_4] : memref<1x64xf32, #tpu.memory_space<vmem>>, vector<1x64xf32>
    %4 = vector.broadcast %3 : vector<1x64xf32> to vector<8x64xf32>
    %5 = arith.addf %2, %4 : vector<8x64xf32>
    %cst_5 = arith.constant 0.000000e+00 : f32
    %6 = vector.broadcast %cst_5 : f32 to vector<8x64xf32>
    %7 = arith.maximumf %5, %6 : vector<8x64xf32>
    %8 = arith.truncf %7 : vector<8x64xf32> to vector<8x64xbf16>
    %c0_6 = arith.constant 0 : index
    %c0_7 = arith.constant 0 : index
    %9 = vector.load %arg4[%c0_6, %c0_7] : memref<64x64xbf16, #tpu.memory_space<vmem>>, vector<64x64xbf16>
    %cst_8 = arith.constant dense<0.000000e+00> : vector<8x64xf32>
    %10 = tpu.matmul %8, %9, %cst_8 {dimension_numbers = #tpu.dot_dimension_numbers<[1], [0], [0], [1], [0, 0, 1, 1], [], []>} : vector<8x64xbf16>, vector<64x64xbf16>, vector<8x64xf32> -> vector<8x64xf32>
    %c0_9 = arith.constant 0 : index
    %c0_10 = arith.constant 0 : index
    %11 = vector.load %arg5[%c0_9, %c0_10] : memref<1x64xf32, #tpu.memory_space<vmem>>, vector<1x64xf32>
    %12 = vector.broadcast %11 : vector<1x64xf32> to vector<8x64xf32>
    %13 = arith.addf %10, %12 : vector<8x64xf32>
    %cst_11 = arith.constant 0.000000e+00 : f32
    %14 = vector.broadcast %cst_11 : f32 to vector<8x64xf32>
    %15 = arith.maximumf %13, %14 : vector<8x64xf32>
    %16 = arith.truncf %15 : vector<8x64xf32> to vector<8x64xbf16>
    %c0_12 = arith.constant 0 : index
    %c0_13 = arith.constant 0 : index
    %17 = vector.load %arg6[%c0_12, %c0_13] : memref<64x128xbf16, #tpu.memory_space<vmem>>, vector<64x128xbf16>
    %cst_14 = arith.constant dense<0.000000e+00> : vector<8x128xf32>
    %18 = tpu.matmul %16, %17, %cst_14 {dimension_numbers = #tpu.dot_dimension_numbers<[1], [0], [0], [1], [0, 0, 1, 1], [], []>} : vector<8x64xbf16>, vector<64x128xbf16>, vector<8x128xf32> -> vector<8x128xf32>
    %c0_15 = arith.constant 0 : index
    %c0_16 = arith.constant 0 : index
    %19 = vector.load %arg7[%c0_15, %c0_16] : memref<1x128xf32, #tpu.memory_space<vmem>>, vector<1x128xf32>
    %20 = vector.broadcast %19 : vector<1x128xf32> to vector<8x128xf32>
    %21 = arith.addf %18, %20 : vector<8x128xf32>
    %22 = vector.extract_strided_slice %21 {offsets = [0, 127], sizes = [8, 1], strides = [1, 1]} : vector<8x128xf32> to vector<8x1xf32>
    %cst_17 = arith.constant dense<0.000000e+00> : vector<8xf32>
    %23 = vector.multi_reduction <add>, %21, %cst_17 [1] : vector<8x128xf32> to vector<8xf32>
    %24 = vector.shape_cast %23 : vector<8xf32> to vector<8x1xf32>
    %25 = arith.subf %24, %22 : vector<8x1xf32>
    %26 = tpu.iota {dimensions = array<i32: 0>} : vector<8x1xi32>
    %c0_i32 = arith.constant 0 : i32
    %27 = vector.broadcast %c0_i32 : i32 to vector<8x1xi32>
    %28 = arith.addi %26, %27 : vector<8x1xi32>
    %c2_i32 = arith.constant 2 : i32
    %29 = vector.broadcast %c2_i32 : i32 to vector<8x1xi32>
    %30 = arith.cmpi slt, %28, %29 : vector<8x1xi32>
    %cst_18 = arith.constant 0.000000e+00 : f32
    %31 = vector.broadcast %cst_18 : f32 to vector<8x1xf32>
    %32 = arith.select %30, %25, %31 : vector<8x1xi1>, vector<8x1xf32>
    %33 = vector.shape_cast %32 : vector<8x1xf32> to vector<1x8x1xf32>
    %cst_19 = arith.constant dense<0.000000e+00> : vector<1xf32>
    %34 = vector.multi_reduction <add>, %33, %cst_19 [1, 2] : vector<1x8x1xf32> to vector<1xf32>
    %35 = vector.shape_cast %34 : vector<1xf32> to vector<1x1x1xf32>
    %36 = vector.extract %35[0, 0, 0] : f32 from vector<1x1x1xf32>
    %cst_20 = arith.constant 6.250000e-02 : f32
    %37 = arith.mulf %36, %cst_20 : f32
    %38 = vector.extract_strided_slice %21 {offsets = [0, 0], sizes = [8, 8], strides = [1, 1]} : vector<8x128xf32> to vector<8x8xf32>
    %39 = vector.broadcast %22 : vector<8x1xf32> to vector<8x8xf32>
    %40 = arith.addf %38, %39 : vector<8x8xf32>
    %41 = vector.broadcast %37 : f32 to vector<8x8xf32>
    %42 = arith.subf %40, %41 : vector<8x8xf32>
    %c0_21 = arith.constant 0 : index
    %c0_22 = arith.constant 0 : index
    %43 = vector.load %arg8[%c0_21, %c0_22] : memref<8x8xf32, #tpu.memory_space<vmem>>, vector<8x8xf32>
    tpu.vector_store %arg8[%c0_21, %c0_22], %42 {strides = array<i32>} : memref<8x8xf32, #tpu.memory_space<vmem>>, vector<8x8xf32>,
    return
  }
  func.func @transform_0(%arg0: i32) -> (i32, i32) {
    %c0_i32 = arith.constant 0 : i32
    %c0_i32_0 = arith.constant 0 : i32
    return %arg0, %c0_i32 : i32, i32
  }
  func.func @transform_1(%arg0: i32) -> (i32, i32) {
    %c0_i32 = arith.constant 0 : i32
    %c0_i32_0 = arith.constant 0 : i32
    %c0_i32_1 = arith.constant 0 : i32
    return %c0_i32, %c0_i32_0 : i32, i32
  }
  func.func @transform_2(%arg0: i32) -> (i32, i32) {
    %c0_i32 = arith.constant 0 : i32
    %c0_i32_0 = arith.constant 0 : i32
    %c0_i32_1 = arith.constant 0 : i32
    return %c0_i32, %c0_i32_0 : i32, i32
  }
  func.func @transform_3(%arg0: i32) -> (i32, i32) {
    %c0_i32 = arith.constant 0 : i32
    %c0_i32_0 = arith.constant 0 : i32
    %c0_i32_1 = arith.constant 0 : i32
    return %c0_i32, %c0_i32_0 : i32, i32
  }
  func.func @transform_4(%arg0: i32) -> (i32, i32) {
    %c0_i32 = arith.constant 0 : i32
    %c0_i32_0 = arith.constant 0 : i32
    %c0_i32_1 = arith.constant 0 : i32
    return %c0_i32, %c0_i32_0 : i32, i32
  }
  func.func @transform_5(%arg0: i32) -> (i32, i32) {
    %c0_i32 = arith.constant 0 : i32
    %c0_i32_0 = arith.constant 0 : i32
    %c0_i32_1 = arith.constant 0 : i32
    return %c0_i32, %c0_i32_0 : i32, i32
  }
  func.func @transform_6(%arg0: i32) -> (i32, i32) {
    %c0_i32 = arith.constant 0 : i32
    %c0_i32_0 = arith.constant 0 : i32
    %c0_i32_1 = arith.constant 0 : i32
    return %c0_i32, %c0_i32_0 : i32, i32
  }
  func.func @transform_7(%arg0: i32) -> (i32, i32) {
    %c0_i32 = arith.constant 0 : i32
    %c0_i32_0 = arith.constant 0 : i32
    return %arg0, %c0_i32 : i32, i32
  }
}

</mosaic_0001>

<bundles_post_ra>
// kernel: dueling_dqn_forward.1
= control target key start
LH: loop header
LB: loop body
LE: loop exit
PB: predicated region body
PF: predicated region fallthrough
CT: control target
= control target key end

     0   :  { %v367_v0 = vmov 0.0   ;;  %vm368_vm0 = vmmov 0   ;;  %vm43_vm1 = vcmask 130048   ;;  %vm128_vm2 = vcmask 523264   ;;  %s455_s1 = inlined_call_operand.vmem [shape: bf16[16,64], index: 1, kind: input, shape index: {}]   ;;  %s456_s0 = inlined_call_operand.vmem [shape: bf16[8,16], index: 0, kind: input, shape index: {}]   ;;  %s457_s3 = inlined_call_operand.vmem [shape: bf16[64,64], index: 3, kind: input, shape index: {}]   ;;  %s458_s5 = inlined_call_operand.vmem [shape: bf16[64,128], index: 5, kind: input, shape index: {}]   ;;  %s459_s2 = inlined_call_operand.vmem [shape: f32[1,64], index: 2, kind: input, shape index: {}]   ;;  %s460_s4 = inlined_call_operand.vmem [shape: f32[1,64], index: 4, kind: input, shape index: {}]   ;;  %s461_s6 = inlined_call_operand.vmem [shape: f32[1,128], index: 6, kind: input, shape index: {}]   ;;  %s462_s7 = inlined_call_operand.vmem [shape: f32[8,8], index: 7, kind: output, shape index: {}]  }
   0x1   :  { %320 = vmatprep.subr.bf16.mxu0 %v367_v0  ;;  %v358_v1 = vld [vmem:[%s455_s1] sm:$0xff]   ;;  %322 = vmatprep.mubr.msk.bf16.mxu0 %vm368_vm0, %v367_v0  ;;  %v360_v4 = vld [vmem:[%s457_s3 + $0x8] sm:$0xff]   ;;  %v361_v5 = vld [vmem:[%s457_s3 + $0x10] sm:$0xff]   ;;  %v259_v33 = vlaneseq  ;;  %v369_v34 = vmov 127   ;;  %vm267_vm4 = vcmask 7168   ;;  %vm287_vm5 = vcmask 64512  }
   0x2   :  { %v27_v2 = vld [vmem:[%s456_s0] sm:$0xf]  ;;  %326 = vmatprep.subr.bf16.mxu1 %v367_v0  ;;  %334 = vmatprep.mubr.msk.bf16.mxu1 %vm368_vm0, %v367_v0  ;;  %v362_v6 = vld [vmem:[%s457_s3 + $0x18] sm:$0xff]   ;;  %v364_v8 = vld [vmem:[%s458_s5 + $0x8] sm:$0xff]  }
   0x3   :  { %321 = vmatpush3.bf16.msra.mxu0 %v358_v1  ;;  %v359_v3 = vld [vmem:[%s457_s3] sm:$0xff]   ;;  %v365_v17 = vld [vmem:[%s458_s5 + $0x10] sm:$0xff]   ;;  %v366_v18 = vld [vmem:[%s458_s5 + $0x18] sm:$0xff]   ;;  %356 = vset.pattern.permute.xlu1 %v369_v34  ;;  %v260_v35 = vshrl.u32 %v259_v33, 7 }
   0x4   :  { %338 = vmatprep.subr.bf16.mxu0 %v367_v0  ;;  %327 = vmatpush3.bf16.msra.mxu1 %v359_v3  ;;  %v363_v7 = vld [vmem:[%s458_s5] sm:$0xff]  }
   0x5   :  { %328 = vmatprep.subr.bf16.mxu1 %v367_v0  ;;  %v293_v9 = vld [vmem:[%s459_s2] ss:$0 sm:$0xff]  ;;  %357 = vset.pattern.permute.xlu0 %v369_v34  ;;  %vm261_vm3 = vcmp.lt.s32.totalorder %v260_v35, 2 }
   0x6   :  { %323 = vmatmul.mubr.msk.bf16.vlgmr.msra.gmra.mrb[0].mxu0 %vm43_vm1, %v27_v2  ;;  %v296_v19 = vld [vmem:[%s460_s4] ss:$0 sm:$0xff]  ;;  %s370_s4 = smov 1  }
   0x7   :  { %346 = vmatprep.mubr.msk.bf16.mxu0 %vm368_vm0, %v367_v0  ;;  %339 = vmatpush3.bf16.msra.mxu0 %v363_v7  ;;  %v302_v27 = vld [vmem:[%s461_s6] ss:$0 sm:$0xff] }
   0x8   :  { %329 = vmatpush3.bf16.msra.mxu1 %v360_v4  ;;  %340 = vmatprep.subr.bf16.mxu0 %v367_v0 }
   0x9   :  { %330 = vmatprep.subr.bf16.mxu1 %v367_v0 }
   0xb   :  { %341 = vmatpush3.bf16.msra.mxu0 %v364_v8 }
   0xc   :  { %331 = vmatpush3.bf16.msra.mxu1 %v361_v5  ;;  %342 = vmatprep.subr.bf16.mxu0 %v367_v0 }
   0xd   :  { %332 = vmatprep.subr.bf16.mxu1 %v367_v0 }
   0xf   :  { %343 = vmatpush3.bf16.msra.mxu0 %v365_v17 }
  0x10   :  { %333 = vmatpush3.bf16.msra.mxu1 %v362_v6  ;;  %344 = vmatprep.subr.bf16.mxu0 %v367_v0 }
  0x13   :  { %345 = vmatpush3.bf16.msra.mxu0 %v366_v18 }
  0xd9   :  { %v81_v10 = vpop.f32.mrb[0].mxu0 }
  0xda   :  { %v82_v11 = vadd.f32 %v293_v9, %v81_v10  ;;  %v324_v12 = vpop.f32.mrb[1].mxu0 }
  0xdb   :  { %v84_v13 = vpop.f32.mrb[2].mxu0 }
  0xdc   :  { %v87_v14 = vmax.f32 %v82_v11, 0.0  ;;  %v325_v15 = vpop.f32.mrb[3].mxu0 }
  0xde   :  { %v88_v16 = vpack.c.bf16 %v87_v14, %v87_v14 }
  0xe0   :  { %335 = vmatmul.mubr.msk.bf16.vlgmr.msra.gmra.mrb[0].mxu1 %vm128_vm2, %v88_v16 }
 0x1b3   :  { %v166_v20 = vpop.f32.mrb[0].mxu1 }
 0x1b4   :  { %v167_v21 = vadd.f32 %v296_v19, %v166_v20  ;;  %v336_v22 = vpop.f32.mrb[1].mxu1 }
 0x1b5   :  { %v169_v23 = vpop.f32.mrb[2].mxu1 }
 0x1b6   :  { %v172_v24 = vmax.f32 %v167_v21, 0.0  ;;  %v337_v25 = vpop.f32.mrb[3].mxu1 }
 0x1b8   :  { %v173_v26 = vpack.c.bf16 %v172_v24, %v172_v24 }
 0x1ba   :  { %347 = vmatmul.mubr.msk.bf16.vlgmr.msra.gmra.mrb[4].mxu0 %vm128_vm2, %v173_v26 }
 0x28d   :  { %v250_v28 = vpop.f32.mrb[4].mxu0 }
 0x28e   :  { %v251_v29 = vadd.f32 %v302_v27, %v250_v28  ;;  %v348_v30 = vpop.f32.mrb[5].mxu0 }
 0x28f   :  { %v253_v31 = vpop.f32.mrb[6].mxu0 }
 0x290   :  { %256 = vadd.xlane.f32.xlu0 %v251_v29  ;;  %v349_v32 = vpop.f32.mrb[7].mxu0 }
 0x31d   :  { %v257_v36 = vpop.xlane.xlu0 %256 }
 0x31e   :  { %v258_v37 = vsub.f32 %v257_v36, %v251_v29 }
 0x320   :  { %v262_v38 = vsel %vm261_vm3, %v258_v37, 0.0 }
 0x321   :  { %264 = vrot.lane.b32.xlu0 %v262_v38, %s370_s4 }
 0x393   :  { %v265_v39 = vpop.permute.xlu0 %264 }
 0x394   :  { %v268_v40 = vsel %vm267_vm4, %v265_v39, 0.0 }
 0x395   :  { %269 = vadd.xlane.f32.xlu1 %v268_v40 }
 0x3a6   :  { %281 = vperm.xlu1 %356, %v251_v29  }
 0x422   :  { %v270_v41 = vpop.xlane.xlu1 %269 }
 0x423   :  { %v271_v42 = vrot.slane %v270_v41, 4 }
 0x425   :  { %v272_v43 = vadd.f32 %v271_v42, %v270_v41 }
 0x426   :  { %v282_v48 = vpop.permute.xlu1 %281 }
 0x427   :  { %v273_v44 = vrot.slane %v272_v43, 2  ;;  %v284_v49 = vadd.f32 %v282_v48, %v251_v29 }
 0x429   :  { %v274_v45 = vadd.f32 %v273_v44, %v272_v43 }
 0x42b   :  { %v275_v46 = vrot.slane %v274_v45, 1 }
 0x42d   :  { %v276_v47 = vadd.f32 %v275_v46, %v274_v45 }
 0x42f   :  { %350 = vpush %v276_v47 }
 0x460   :  { %s351_s5 = spop %350 }
 0x461   :  { %s278_s6 = smul.f32 0.0625, %s351_s5 }
 0x463   :  { %v285_v50 = vstv %s278_s6 }
 0x464   :  { %v286_v51 = vsub.f32 %v284_v49, %v285_v50 }
 0x466   :  { %288 = vst.msk [vmem:[%s462_s7] sm:$0xff] %vm287_vm5, %v286_v51 }

</bundles_post_ra>
